<compile_context>
chip_gen: v7x
topology: tpu7x:2x2x1
jax: 0.10.0
libtpu: 0.0.40
codegen_flags: <defaults>
</compile_context>

<pallas_src>
import jax
import jax.numpy as jnp
import numpy as np
from jax.experimental import pallas as pl
from jax.experimental.pallas import tpu as pltpu

HIGHEST = jax.lax.Precision.HIGHEST


def conv_film_kernel(x_ref, w_ref, g_ref, b_ref, o_ref):
    # x_ref: (B, H, KWCp)   bf16  row-wise im2col (lane-dense), zero-padded to KWCp
    # w_ref: (KWCp, W*Cout) bf16  banded conv weight (zero rows in the pad region)
    # g_ref: (B, 1, W*Cout) f32   FiLM gamma, pre-tiled over W
    # b_ref: (B, 1, W*Cout) f32   fused bias: gamma*conv_bias + film_beta, pre-tiled
    # o_ref: (B, H, W*Cout) f32   lane-dense output slab
    B, H, KWCp = x_ref.shape
    WCo = w_ref.shape[1]
    lhs = x_ref[...].reshape(B * H, KWCp)                 # collapse major dims (free)
    acc = jnp.dot(lhs, w_ref[...],
                  preferred_element_type=jnp.float32)     # single bf16 MXU matmul, f32 acc
    y = g_ref[...] * acc.reshape(B, H, WCo) + b_ref[...]  # FiLM (conv bias folded in)
    o_ref[...] = jnp.maximum(y, 0.0).astype(o_ref.dtype)  # ReLU, unmasked 128-lane store


def conv2d_film_block(x_nchw, lang_emb, w_oihw, b_conv, wg, bg, wb, bb):
    """Forward of Conv2DFiLMBlock (film_place='after', film_mode='rand', norm=None,
    activation='relu', stride=1, replicate padding).
    x_nchw: (B, Cin, H, W), lang_emb: (B, L).  Returns NCHW (B, Cout, H, W)."""
    B, Cin, H, W = x_nchw.shape
    Cout, _, K, _ = w_oihw.shape
    p = K // 2
    Wp = W + 2 * p
    KWC = K * Wp * Cin                      # true contraction size (216)
    KWCp = -(-KWC // 128) * 128             # padded to a lane multiple (256)
    WCo = W * Cout                          # matmul N dim / output lane width (128)
    f32, bf16 = jnp.float32, jnp.bfloat16

    # ---- input glue: layout + replicate pad + row-wise im2col over the kh taps ----
    # TODO(synk): could be pulled into the pallas_call operand via
    # CompilerParams(allow_input_fusion) to save one HBM round trip; negligible here.
    x_nhwc = jnp.transpose(x_nchw, (0, 2, 3, 1)).astype(bf16)              # (B,H,W,Cin)
    xpad = jnp.pad(x_nhwc, ((0, 0), (p, p), (p, p), (0, 0)), mode="edge")  # (B,Hp,Wp,Cin)
    slabs = [xpad[:, kh:kh + H].reshape(B, H, Wp * Cin) for kh in range(K)]
    if KWCp > KWC:
        slabs.append(jnp.zeros((B, H, KWCp - KWC), bf16))
    x_big = jnp.concatenate(slabs, axis=2)                                 # (B, H, KWCp)

    # ---- banded conv weight: one einsum against a host-constant 0/1 band mask ----
    # w_big[(kh, w_in, ci), (w, co)] = W_hwio[kh, w_in - w, ci, co] for 0 <= w_in-w < K
    sel = np.zeros((K, Wp, W), np.float32)
    kw_i, w_i = np.meshgrid(np.arange(K), np.arange(W), indexing="ij")
    sel[kw_i, w_i + kw_i, w_i] = 1.0                                       # host constant
    w_hwio = jnp.transpose(w_oihw, (2, 3, 1, 0)).astype(f32)               # (K,K,Cin,Cout)
    w_big = jnp.einsum("hkio,kpw->hpiwo", w_hwio, jnp.asarray(sel)).reshape(KWC, WCo)
    w_big = jnp.pad(w_big, ((0, KWCp - KWC), (0, 0))).astype(bf16)         # (KWCp, WCo)

    # ---- FiLM side path: one fused dot; conv bias folded into beta ----
    wgb = jnp.concatenate([wg, wb], axis=0)                                # (2*Cout, L)
    bgb = jnp.concatenate([bg, bb], axis=0)                                # (2*Cout,)
    gb = jnp.dot(lang_emb, wgb.T, precision=HIGHEST) + bgb                 # (B, 2*Cout)
    gamma, beta = gb[:, :Cout], gb[:, Cout:]
    beta_eff = gamma * b_conv[None, :] + beta                              # (B, Cout)
    gamma_t = jnp.tile(gamma, (1, W)).reshape(B, 1, WCo).astype(f32)       # (B, 1, 128)
    beta_t = jnp.tile(beta_eff, (1, W)).reshape(B, 1, WCo).astype(f32)     # (B, 1, 128)

    vmem = pl.BlockSpec(memory_space=pltpu.MemorySpace.VMEM)
    out = pl.pallas_call(
        conv_film_kernel,
        out_shape=jax.ShapeDtypeStruct((B, H, WCo), x_nchw.dtype),
        in_specs=[vmem, vmem, vmem, vmem],   # whole arrays in VMEM, single invocation
        out_specs=vmem,
    )(x_big, w_big, gamma_t, beta_t)

    # back to NCHW (module contract)
    return jnp.transpose(out.reshape(B, H, W, Cout), (0, 3, 1, 2))


def reference(x_nchw, lang_emb, w_oihw, b_conv, wg, bg, wb, bb):
    """Pure-JAX f32 reference matching the PyTorch forward (NCHW)."""
    K = w_oihw.shape[-1]
    p = K // 2
    xpad = jnp.pad(x_nchw, ((0, 0), (0, 0), (p, p), (p, p)), mode="edge")
    y = jax.lax.conv_general_dilated(
        xpad, w_oihw, window_strides=(1, 1), padding="VALID",
        dimension_numbers=("NCHW", "OIHW", "NCHW"), precision=HIGHEST)
    y = y + b_conv[None, :, None, None]
    gamma = jnp.dot(lang_emb, wg.T, precision=HIGHEST) + bg      # nn.Linear: x @ W.T + b
    beta = jnp.dot(lang_emb, wb.T, precision=HIGHEST) + bb
    y = gamma[:, :, None, None] * y + beta[:, :, None, None]
    return jnp.maximum(y, 0.0)


if __name__ == "__main__":
    # Module config: in_channels=4, out_channels=8, kernel_sizes=3, strides=1,
    # lang_emb_dim=32, norm=None, activation='relu', film_mode='rand', film_place='after'
    B, Cin, Cout, H, W, K, L = 2, 4, 8, 16, 16, 3, 32

    key = jax.random.PRNGKey(0)
    ks = jax.random.split(key, 8)
    x = jax.random.normal(ks[0], (B, Cin, H, W), jnp.float32)
    lang = jax.random.normal(ks[1], (B, L), jnp.float32)

    # Deterministic synthetic parameters (shapes follow nn.Conv2d / nn.Linear).
    w_oihw = jax.random.normal(ks[2], (Cout, Cin, K, K), jnp.float32) * 0.1  # kaiming-ish
    b_conv = jnp.zeros((Cout,), jnp.float32)                                 # zeros_ init
    wg = jax.random.normal(ks[3], (Cout, L), jnp.float32) * 0.1              # FiLM rand
    bg = jax.random.normal(ks[4], (Cout,), jnp.float32) * 0.1
    wb = jax.random.normal(ks[5], (Cout, L), jnp.float32) * 0.1
    bb = jax.random.normal(ks[6], (Cout,), jnp.float32) * 0.1

    out = jax.jit(conv2d_film_block)(x, lang, w_oihw, b_conv, wg, bg, wb, bb)
    out = jax.block_until_ready(out)

    ref = reference(x, lang, w_oihw, b_conv, wg, bg, wb, bb)
    # Tolerance sized for the intentionally relaxed precision (bf16-in / f32-accumulate
    # single-pass MXU matmul vs. the f32 HIGHEST reference), per the perf review.
    np.testing.assert_allclose(np.asarray(out), np.asarray(ref), rtol=1e-2, atol=1e-2)

    print("KERNEL_OK")
</pallas_src>

<mosaic_0001>
module attributes {stable_mosaic.version = 11 : i64} {
  func.func @conv_film_kernel(%arg0: memref<2x16x256xbf16, #tpu.memory_space<vmem>>, %arg1: memref<256x128xbf16, #tpu.memory_space<vmem>>, %arg2: memref<2x1x128xf32, #tpu.memory_space<vmem>>, %arg3: memref<2x1x128xf32, #tpu.memory_space<vmem>>, %arg4: memref<2x16x128xf32, #tpu.memory_space<vmem>>) attributes {dimension_semantics = [], scalar_prefetch = 0 : i64, scratch_operands = 0 : i64, tpu.core_type = #tpu.core_type<tc>} {
    %c0 = arith.constant 0 : index
    %c0_0 = arith.constant 0 : index
    %c0_1 = arith.constant 0 : index
    %0 = vector.load %arg0[%c0, %c0_0, %c0_1] : memref<2x16x256xbf16, #tpu.memory_space<vmem>>, vector<2x16x256xbf16>
    %1 = vector.shape_cast %0 : vector<2x16x256xbf16> to vector<32x256xbf16>
    %c0_2 = arith.constant 0 : index
    %c0_3 = arith.constant 0 : index
    %2 = vector.load %arg1[%c0_2, %c0_3] : memref<256x128xbf16, #tpu.memory_space<vmem>>, vector<256x128xbf16>
    %cst = arith.constant dense<0.000000e+00> : vector<32x128xf32>
    %3 = tpu.matmul %1, %2, %cst {dimension_numbers = #tpu.dot_dimension_numbers<[1], [0], [0], [1], [0, 0, 1, 1], [], []>} : vector<32x256xbf16>, vector<256x128xbf16>, vector<32x128xf32> -> vector<32x128xf32>
    %c0_4 = arith.constant 0 : index
    %c0_5 = arith.constant 0 : index
    %c0_6 = arith.constant 0 : index
    %4 = vector.load %arg2[%c0_4, %c0_5, %c0_6] : memref<2x1x128xf32, #tpu.memory_space<vmem>>, vector<2x1x128xf32>
    %5 = vector.shape_cast %3 : vector<32x128xf32> to vector<2x16x128xf32>
    %6 = vector.broadcast %4 : vector<2x1x128xf32> to vector<2x16x128xf32>
    %7 = arith.mulf %6, %5 : vector<2x16x128xf32>
    %c0_7 = arith.constant 0 : index
    %c0_8 = arith.constant 0 : index
    %c0_9 = arith.constant 0 : index
    %8 = vector.load %arg3[%c0_7, %c0_8, %c0_9] : memref<2x1x128xf32, #tpu.memory_space<vmem>>, vector<2x1x128xf32>
    %9 = vector.broadcast %8 : vector<2x1x128xf32> to vector<2x16x128xf32>
    %10 = arith.addf %7, %9 : vector<2x16x128xf32>
    %cst_10 = arith.constant 0.000000e+00 : f32
    %11 = vector.broadcast %cst_10 : f32 to vector<2x16x128xf32>
    %12 = arith.maximumf %10, %11 : vector<2x16x128xf32>
    %c0_11 = arith.constant 0 : index
    %c0_12 = arith.constant 0 : index
    %c0_13 = arith.constant 0 : index
    %13 = vector.load %arg4[%c0_11, %c0_12, %c0_13] : memref<2x16x128xf32, #tpu.memory_space<vmem>>, vector<2x16x128xf32>
    tpu.vector_store %arg4[%c0_11, %c0_12, %c0_13], %12 {strides = array<i32>} : memref<2x16x128xf32, #tpu.memory_space<vmem>>, vector<2x16x128xf32>,
    return
  }
}

</mosaic_0001>

<bundles_post_ra>
// kernel: conv2d_film_block.1
= control target key start
LH: loop header
LB: loop body
LE: loop exit
PB: predicated region body
PF: predicated region fallthrough
CT: control target
= control target key end

     0   :  { %s466_s1 = inlined_call_operand.vmem [shape: bf16[256,128], index: 1, kind: input, shape index: {}]   ;;  %s467_s0 = inlined_call_operand.vmem [shape: bf16[2,16,256], index: 0, kind: input, shape index: {}]   ;;  %s468_s2 = inlined_call_operand.vmem [shape: f32[2,1,128], index: 2, kind: input, shape index: {}]   ;;  %s469_s3 = inlined_call_operand.vmem [shape: f32[2,1,128], index: 3, kind: input, shape index: {}]   ;;  %s470_s4 = inlined_call_operand.vmem [shape: f32[2,16,128], index: 4, kind: output, shape index: {}]  }
   0x1   :  { %v335_v0 = vld [vmem:[%s466_s1 + $0x40] sm:$0xff]   ;;  %v337_v2 = vld [vmem:[%s466_s1 + $0x48] sm:$0xff]   ;;  %v339_v4 = vld [vmem:[%s466_s1 + $0x50] sm:$0xff]  }
   0x2   :  { %v336_v1 = vld [vmem:[%s466_s1] sm:$0xff]   ;;  %291 = vmatprep.subr.bf16.mxu0 %v335_v0  ;;  %319 = vmatprep.subr.bf16.mxu1 %v335_v0  ;;  %v338_v3 = vld [vmem:[%s466_s1 + $0x8] sm:$0xff]   ;;  %v340_v5 = vld [vmem:[%s466_s1 + $0x10] sm:$0xff]  }
   0x3   :  { %292 = vmatpush3.bf16.msra.mxu0 %v336_v1  ;;  %327 = vmatpush3.bf16.msra.mxu1 %v336_v1  ;;  %v341_v6 = vld [vmem:[%s466_s1 + $0x58] sm:$0xff]   ;;  %v343_v8 = vld [vmem:[%s466_s1 + $0x60] sm:$0xff]   ;;  %v345_v10 = vld [vmem:[%s466_s1 + $0x68] sm:$0xff]  }
   0x4   :  { %293 = vmatprep.subr.bf16.mxu0 %v337_v2  ;;  %320 = vmatprep.subr.bf16.mxu1 %v337_v2  ;;  %v342_v7 = vld [vmem:[%s466_s1 + $0x18] sm:$0xff]   ;;  %v344_v9 = vld [vmem:[%s466_s1 + $0x20] sm:$0xff]   ;;  %v346_v13 = vld [vmem:[%s466_s1 + $0x28] sm:$0xff]  }
   0x5   :  { %v353_v11 = vld [vmem:[%s467_s0 + $0x4] ss:$8 sps:$4 sm:$0xff]   ;;  %v356_v12 = vld [vmem:[%s467_s0 + $0x14] ss:$8 sps:$4 sm:$0xff]   ;;  %v351_v18 = vld [vmem:[%s467_s0] ss:$8 sps:$4 sm:$0xff]  }
   0x6   :  { %v347_v14 = vld [vmem:[%s466_s1 + $0x70] sm:$0xff]   ;;  %202 = vmatprep.mubr.bf16.mxu0 %v353_v11  ;;  %210 = vmatprep.mubr.bf16.mxu1 %v356_v12  ;;  %v349_v16 = vld [vmem:[%s466_s1 + $0x78] sm:$0xff]   ;;  %v287_v23 = vld [vmem:[%s468_s2] ss:$0 sm:$0xff] }
   0x7   :  { %294 = vmatpush3.bf16.msra.mxu0 %v338_v3  ;;  %328 = vmatpush3.bf16.msra.mxu1 %v338_v3  ;;  %v348_v15 = vld [vmem:[%s466_s1 + $0x30] sm:$0xff]   ;;  %v350_v17 = vld [vmem:[%s466_s1 + $0x38] sm:$0xff]   ;;  %v288_v25 = vld [vmem:[%s468_s2 + $0x1] ss:$0 sm:$0xff] }
   0x8   :  { %295 = vmatprep.subr.bf16.mxu0 %v339_v4  ;;  %321 = vmatprep.subr.bf16.mxu1 %v339_v4  ;;  %v354_v19 = vld [vmem:[%s467_s0 + $0x10] ss:$8 sps:$4 sm:$0xff]   ;;  %v289_v30 = vld [vmem:[%s469_s3] ss:$0 sm:$0xff]  ;;  %v290_v31 = vld [vmem:[%s469_s3 + $0x1] ss:$0 sm:$0xff] }
   0xb   :  { %296 = vmatpush3.bf16.msra.mxu0 %v340_v5  ;;  %329 = vmatpush3.bf16.msra.mxu1 %v340_v5 }
   0xc   :  { %297 = vmatprep.subr.bf16.mxu0 %v341_v6  ;;  %322 = vmatprep.subr.bf16.mxu1 %v341_v6 }
   0xf   :  { %298 = vmatpush3.bf16.msra.mxu0 %v342_v7  ;;  %330 = vmatpush3.bf16.msra.mxu1 %v342_v7 }
  0x10   :  { %299 = vmatprep.subr.bf16.mxu0 %v343_v8  ;;  %323 = vmatprep.subr.bf16.mxu1 %v343_v8 }
  0x13   :  { %300 = vmatpush3.bf16.msra.mxu0 %v344_v9  ;;  %331 = vmatpush3.bf16.msra.mxu1 %v344_v9 }
  0x14   :  { %301 = vmatprep.subr.bf16.mxu0 %v345_v10  ;;  %324 = vmatprep.subr.bf16.mxu1 %v345_v10 }
  0x17   :  { %302 = vmatpush3.bf16.msra.mxu0 %v346_v13  ;;  %332 = vmatpush3.bf16.msra.mxu1 %v346_v13 }
  0x18   :  { %303 = vmatprep.subr.bf16.mxu0 %v347_v14  ;;  %325 = vmatprep.subr.bf16.mxu1 %v347_v14 }
  0x1b   :  { %304 = vmatpush3.bf16.msra.mxu0 %v348_v15  ;;  %333 = vmatpush3.bf16.msra.mxu1 %v348_v15 }
  0x1c   :  { %305 = vmatprep.subr.bf16.mxu0 %v349_v16  ;;  %326 = vmatprep.subr.bf16.mxu1 %v349_v16 }
  0x1f   :  { %306 = vmatpush3.bf16.msra.mxu0 %v350_v17  ;;  %334 = vmatpush3.bf16.msra.mxu1 %v350_v17 }
  0x22   :  { %203 = vmatmul.mubr.bf16.vlgmr.msra.gmra.mrb[0].mxu0 %v351_v18  ;;  %211 = vmatmul.mubr.bf16.vlgmr.msra.gmra.mrb[0].mxu1 %v354_v19 }
  0xf5   :  { %v307_v20 = vpop.f32.mrb[0].mxu0  ;;  %v313_v21 = vpop.f32.mrb[0].mxu1 }
  0xf6   :  { %v308_v22 = vpop.f32.mrb[1].mxu0  ;;  %v314_v24 = vpop.f32.mrb[1].mxu1 }
  0xf7   :  { %v309_v26 = vadd.f32 %v308_v22, %v307_v20  ;;  %v315_v27 = vadd.f32 %v314_v24, %v313_v21  ;;  %v310_v28 = vpop.f32.mrb[2].mxu0  ;;  %v316_v29 = vpop.f32.mrb[2].mxu1 }
  0xf8   :  { %v311_v32 = vpop.f32.mrb[3].mxu0  ;;  %v317_v33 = vpop.f32.mrb[3].mxu1 }
  0xf9   :  { %v233_v34 = vmul.f32 %v309_v26, %v287_v23  ;;  %v235_v35 = vmul.f32 %v315_v27, %v288_v25  ;;  %v312_v36 = vadd.f32 %v311_v32, %v310_v28  ;;  %v318_v37 = vadd.f32 %v317_v33, %v316_v29 }
  0xfb   :  { %v251_v38 = vadd.f32 %v289_v30, %v233_v34  ;;  %v253_v39 = vadd.f32 %v290_v31, %v235_v35  ;;  %v234_v40 = vmul.f32 %v312_v36, %v287_v23  ;;  %v236_v41 = vmul.f32 %v318_v37, %v288_v25 }
  0xfd   :  { %v255_v42 = vmax.f32 %v251_v38, 0.0  ;;  %v257_v43 = vmax.f32 %v253_v39, 0.0  ;;  %v252_v44 = vadd.f32 %v289_v30, %v234_v40  ;;  %v254_v45 = vadd.f32 %v290_v31, %v236_v41 }
  0xff   :  { %259 = vst [vmem:[%s470_s4] sm:$0xff] %v255_v42  ;;  %261 = vst [vmem:[%s470_s4 + $0x10] sm:$0xff] %v257_v43  ;;  %v256_v46 = vmax.f32 %v252_v44, 0.0  ;;  %v258_v47 = vmax.f32 %v254_v45, 0.0 }
 0x101   :  { %260 = vst [vmem:[%s470_s4 + $0x8] sm:$0xff] %v256_v46  ;;  %262 = vst [vmem:[%s470_s4 + $0x18] sm:$0xff] %v258_v47 }

</bundles_post_ra>
